<compile_context>
chip_gen: v7x
topology: tpu7x:2x2x1
jax: 0.10.0
libtpu: 0.0.40
codegen_flags: <defaults>
</compile_context>

<pallas_src>
import functools
import math

import jax
import jax.numpy as jnp
from jax import lax
from jax.experimental import pallas as pl
from jax.experimental.pallas import tpu as pltpu


def _cdiv(a, b):
    return (a + b - 1) // b


def _round_up(x, m):
    return ((x + m - 1) // m) * m


def _fold_groups(acc, l_out, groups):
    """acc: (tb, groups*l_out) f32 -> (tb, l_out). Static lane slices, finalize-only."""
    if groups == 1:
        return acc
    total = acc[:, 0:l_out]
    for g in range(1, groups):
        total = total + acc[:, g * l_out:(g + 1) * l_out]
    return total


def _pool_kernel_single(x_ref, o_ref, *, n_total, l_out, groups):
    """Single node tile: x_ref (tb, n_packed, lp) -> o_ref (tb, L) = mean over nodes."""
    x = x_ref[...].astype(jnp.float32)
    acc = jnp.sum(x, axis=1)
    total = _fold_groups(acc, l_out, groups)
    o_ref[...] = (total * (1.0 / float(n_total))).astype(o_ref.dtype)


def _pool_kernel_multi(x_ref, o_ref, acc_ref, *, n_total, n_packed, l_out, groups,
                       tn, mask_nodes, defer_sublane):
    """Node-tiled accumulation (reduction axis k is last).

    x_ref: (tb, tn, lp); o_ref: (tb, L);
    acc_ref: (tb, 8, lp) f32 when defer_sublane else (tb, lp) f32.
    """
    k = pl.program_id(1)

    @pl.when(k == 0)
    def _init():
        acc_ref[...] = jnp.zeros_like(acc_ref)

    x = x_ref[...].astype(jnp.float32)                     # (tb, tn, lp)
    if mask_nodes:
        # Tail node tile: zero the rows past the true (packed) node count.
        node_idx = lax.broadcasted_iota(jnp.int32, x.shape, 1) + k * tn
        x = jnp.where(node_idx < n_packed, x, 0.0)

    if defer_sublane:
        # Keep 8 sublanes live: per-step work is pure vld+vadd (no per-step XLU
        # cross-sublane fold / sublane scatter). Static, tile-aligned slices.
        part = x[:, 0:8, :]
        for j in range(1, tn // 8):
            part = part + x[:, 8 * j:8 * (j + 1), :]
        acc_ref[...] += part
    else:
        # Very large node tile: compute dwarfed by DMA anyway; plain reduce.
        acc_ref[...] += jnp.sum(x, axis=1)

    @pl.when(k == pl.num_programs(1) - 1)
    def _finalize():
        acc = acc_ref[...]
        if defer_sublane:
            acc = jnp.sum(acc, axis=1)                     # one XLU fold per block
        total = _fold_groups(acc, l_out, groups)
        # Divide by the true node count, never a padded one.
        o_ref[...] = (total * (1.0 / float(n_total))).astype(o_ref.dtype)


def graph_pooling(x, *, target_block_bytes=4 << 20, max_block_bytes=4 << 20,
                  input_buffering=None):
    """Pallas implementation of GraphPooling.forward: mean over the node axis.

    Args:
      x: (B, N, L) array.
    Returns:
      (B, 1, L) array with the same dtype as x.
    """
    B, N, L = x.shape
    dtype = x.dtype
    itemsize = jnp.dtype(dtype).itemsize
    # Dtype-aware sublane multiple for (second-minor, lane) tiling:
    # f32 -> 8, bf16 -> 16, int8/fp8 -> 32.
    sub = max(8, 32 // itemsize)

    # --- Lane packing: fold G nodes per row so rows are lane-dense. ---------------
    groups = 1
    if L < 128:
        ideal = math.lcm(L, 128) // L          # smallest G with (G*L) % 128 == 0
        for d in range(ideal, 1, -1):
            if ideal % d == 0 and N % d == 0:
                groups = d
                break
    n_packed = N // groups
    lp = groups * L
    xp = x.reshape(B, n_packed, lp)            # contiguous (free) reshape

    # --- Batch fusion: tb batch rows per grid step (~target_block_bytes / block). --
    row_bytes = n_packed * lp * itemsize
    tb = max(1, target_block_bytes // max(1, row_bytes))
    if tb >= B:
        tb = B                                  # single full-batch block (full-dim OK)
    else:
        tb = (tb // sub) * sub
        if tb == 0:
            tb = min(sub, B)
    # Give both v7x TensorCores work when the whole batch landed in one block.
    if _cdiv(B, tb) < 2 and B > sub:
        tb = min(B, _round_up(_cdiv(B, 2), sub))
    num_b_blocks = _cdiv(B, tb)

    # --- Node tiling (reduction axis last) only when one block would be too big. ---
    block_bytes = tb * row_bytes
    if block_bytes <= max_block_bytes:
        tn, grid_k = n_packed, 1
    else:
        tn = max_block_bytes // max(1, tb * lp * itemsize)
        tn = max(sub, (tn // sub) * sub)        # dtype-aware, bounded tile
        if tn >= n_packed:
            tn, grid_k = n_packed, 1
        else:
            grid_k = _cdiv(n_packed, tn)
    mask_nodes = (grid_k > 1) and (grid_k * tn != n_packed)
    defer_sublane = (grid_k > 1) and (tn <= 512)   # bound static unroll

    # --- Scoped VMEM budget: 2x input block + f32 temporaries + output + acc. ------
    lanes = _round_up(lp, 128)
    tn_pad = _round_up(tn, sub)
    in_block = tb * tn_pad * lanes * itemsize
    f32_tmp = tb * tn_pad * lanes * 4
    out_block = _round_up(tb, 8) * _round_up(L, 128) * itemsize
    acc_bytes = tb * 8 * lanes * 4 if grid_k > 1 else 0
    needed = 2 * in_block + f32_tmp + 2 * out_block + acc_bytes
    vmem_limit = int(min(48 << 20, max(16 << 20, (needed * 3) // 2)))

    cost = pl.CostEstimate(flops=B * N * L, transcendentals=0,
                           bytes_accessed=B * N * L * itemsize + B * L * itemsize)

    in_kw = {}
    if input_buffering is not None:
        in_kw = dict(pipeline_mode=pl.Buffered(input_buffering))

    if grid_k == 1:
        kernel = functools.partial(_pool_kernel_single,
                                   n_total=N, l_out=L, groups=groups)
        out2d = pl.pallas_call(
            kernel,
            out_shape=jax.ShapeDtypeStruct((B, L), dtype),
            grid=(num_b_blocks,),
            in_specs=[pl.BlockSpec((tb, n_packed, lp), lambda i: (i, 0, 0), **in_kw)],
            out_specs=pl.BlockSpec((tb, L), lambda i: (i, 0)),
            compiler_params=pltpu.CompilerParams(
                dimension_semantics=("parallel",),
                vmem_limit_bytes=vmem_limit),
            cost_estimate=cost,
        )(xp)
    else:
        acc_shape = (tb, 8, lp) if defer_sublane else (tb, lp)
        kernel = functools.partial(_pool_kernel_multi,
                                   n_total=N, n_packed=n_packed, l_out=L,
                                   groups=groups, tn=tn, mask_nodes=mask_nodes,
                                   defer_sublane=defer_sublane)
        out2d = pl.pallas_call(
            kernel,
            out_shape=jax.ShapeDtypeStruct((B, L), dtype),
            grid=(num_b_blocks, grid_k),
            in_specs=[pl.BlockSpec((tb, tn, lp), lambda i, k: (i, k, 0), **in_kw)],
            out_specs=pl.BlockSpec((tb, L), lambda i, k: (i, 0)),
            scratch_shapes=[pltpu.VMEM(acc_shape, jnp.float32)],
            compiler_params=pltpu.CompilerParams(
                dimension_semantics=("parallel", "arbitrary"),
                vmem_limit_bytes=vmem_limit),
            cost_estimate=cost,
        )(xp)

    return out2d.reshape(B, 1, L)


if __name__ == "__main__":
    keys = jax.random.split(jax.random.PRNGKey(0), 6)

    # 1) Module-consistent shapes: B=2 graphs, node_n=16, L=32. Lane-packed (G=4) path.
    x = jax.random.normal(keys[0], (2, 16, 32), dtype=jnp.float32)
    out = jax.block_until_ready(graph_pooling(x))
    ref = jnp.mean(x, axis=1, keepdims=True)
    assert out.shape == (2, 1, 32), out.shape
    assert jnp.allclose(out, ref, atol=1e-5, rtol=1e-5), "mismatch (packed single-step)"

    # 2) L=48 (generalized packing G=8 -> 384 lanes), ragged B.
    x2 = jax.random.normal(keys[1], (5, 24, 48), dtype=jnp.float32)
    out2 = jax.block_until_ready(graph_pooling(x2))
    ref2 = jnp.mean(x2, axis=1, keepdims=True)
    assert out2.shape == (5, 1, 48), out2.shape
    assert jnp.allclose(out2, ref2, atol=1e-5, rtol=1e-5), "mismatch (L=48 packing)"

    # 3) Node-tiled accumulator path (exact node split, deferred sublane reduce).
    x3 = jax.random.normal(keys[2], (4, 256, 32), dtype=jnp.float32)
    out3 = jax.block_until_ready(graph_pooling(x3, max_block_bytes=64 << 10))
    ref3 = jnp.mean(x3, axis=1, keepdims=True)
    assert out3.shape == (4, 1, 32), out3.shape
    assert jnp.allclose(out3, ref3, atol=1e-5, rtol=1e-5), "mismatch (node-tiled)"

    # 4) Node-tiled path with a masked tail tile (N=25 not divisible by tn).
    x4 = jax.random.normal(keys[3], (3, 25, 32), dtype=jnp.float32)
    out4 = jax.block_until_ready(graph_pooling(x4, max_block_bytes=4 << 10))
    ref4 = jnp.mean(x4, axis=1, keepdims=True)
    assert out4.shape == (3, 1, 32), out4.shape
    assert jnp.allclose(out4, ref4, atol=1e-5, rtol=1e-5), "mismatch (masked tail tile)"

    # 5) Ragged batch across multiple batch blocks (B=10, tb=8) -- no padding copy.
    x5 = jax.random.normal(keys[4], (10, 64, 32), dtype=jnp.float32)
    out5 = jax.block_until_ready(graph_pooling(x5, target_block_bytes=64 << 10))
    ref5 = jnp.mean(x5, axis=1, keepdims=True)
    assert out5.shape == (10, 1, 32), out5.shape
    assert jnp.allclose(out5, ref5, atol=1e-5, rtol=1e-5), "mismatch (ragged batch blocks)"

    # 6) bf16 input (dtype-aware tiling, f32 accumulation in-kernel).
    x6 = jax.random.normal(keys[5], (4, 32, 32), dtype=jnp.float32).astype(jnp.bfloat16)
    out6 = jax.block_until_ready(graph_pooling(x6))
    ref6 = jnp.mean(x6.astype(jnp.float32), axis=1, keepdims=True)
    assert out6.shape == (4, 1, 32), out6.shape
    assert jnp.allclose(out6.astype(jnp.float32), ref6, atol=2e-2, rtol=2e-2), \
        "mismatch (bf16 path)"

    print("KERNEL_OK")
</pallas_src>

<mosaic_0001>
module attributes {stable_mosaic.version = 11 : i64} {
  func.func @_pool_kernel_single(%arg0: i32, %arg1: memref<2x4x128xf32, #tpu.memory_space<vmem>>, %arg2: memref<2x32xf32, #tpu.memory_space<vmem>>) attributes {dimension_semantics = [#tpu.dimension_semantics<parallel>], iteration_bounds = array<i64: 1>, scalar_prefetch = 0 : i64, scratch_operands = 0 : i64, tpu.core_type = #tpu.core_type<tc>, window_params = [{transform_indices = @transform_0, window_bounds = array<i64: 2, 4, 128>}, {transform_indices = @transform_1, window_bounds = array<i64: 2, 32>}]} {
    %c0 = arith.constant 0 : index
    %c0_0 = arith.constant 0 : index
    %c0_1 = arith.constant 0 : index
    %0 = vector.load %arg1[%c0, %c0_0, %c0_1] : memref<2x4x128xf32, #tpu.memory_space<vmem>>, vector<2x4x128xf32>
    %cst = arith.constant dense<0.000000e+00> : vector<2x128xf32>
    %1 = vector.multi_reduction <add>, %0, %cst [1] : vector<2x4x128xf32> to vector<2x128xf32>
    %2 = vector.extract_strided_slice %1 {offsets = [0, 0], sizes = [2, 32], strides = [1, 1]} : vector<2x128xf32> to vector<2x32xf32>
    %3 = vector.extract_strided_slice %1 {offsets = [0, 32], sizes = [2, 32], strides = [1, 1]} : vector<2x128xf32> to vector<2x32xf32>
    %4 = arith.addf %2, %3 : vector<2x32xf32>
    %5 = vector.extract_strided_slice %1 {offsets = [0, 64], sizes = [2, 32], strides = [1, 1]} : vector<2x128xf32> to vector<2x32xf32>
    %6 = arith.addf %4, %5 : vector<2x32xf32>
    %7 = vector.extract_strided_slice %1 {offsets = [0, 96], sizes = [2, 32], strides = [1, 1]} : vector<2x128xf32> to vector<2x32xf32>
    %8 = arith.addf %6, %7 : vector<2x32xf32>
    %cst_2 = arith.constant 6.250000e-02 : f32
    %9 = vector.broadcast %cst_2 : f32 to vector<2x32xf32>
    %10 = arith.mulf %8, %9 : vector<2x32xf32>
    %c0_3 = arith.constant 0 : index
    %c0_4 = arith.constant 0 : index
    %11 = vector.load %arg2[%c0_3, %c0_4] : memref<2x32xf32, #tpu.memory_space<vmem>>, vector<2x32xf32>
    tpu.vector_store %arg2[%c0_3, %c0_4], %10 {strides = array<i32>} : memref<2x32xf32, #tpu.memory_space<vmem>>, vector<2x32xf32>,
    return
  }
  func.func @transform_0(%arg0: i32) -> (i32, i32, i32) {
    %c0_i32 = arith.constant 0 : i32
    %c0_i32_0 = arith.constant 0 : i32
    %c0_i32_1 = arith.constant 0 : i32
    return %arg0, %c0_i32, %c0_i32_0 : i32, i32, i32
  }
  func.func @transform_1(%arg0: i32) -> (i32, i32) {
    %c0_i32 = arith.constant 0 : i32
    %c0_i32_0 = arith.constant 0 : i32
    return %arg0, %c0_i32 : i32, i32
  }
}

</mosaic_0001>

<bundles_post_ra>
// kernel: tpu_custom_call.1
= control target key start
LH: loop header
LB: loop body
LE: loop exit
PB: predicated region body
PF: predicated region fallthrough
CT: control target
= control target key end

     0   :  { %6 = vsyncpa [#allocation3], 0  ;;  %s185_s0 = inlined_call_operand.hbm [shape: f32[2,4,128], index: 0, kind: input, shape index: {}]   ;;  %s186_s1 = inlined_call_operand.hbm [shape: f32[2,32], index: 1, kind: output, shape index: {}]  }
   0x1   :  { %7 = vsyncpa [#allocation4], 0  ;;  %s145_s6 = smov [#allocation2]   ;;  %s97_s10 = scalar_lea.hbm %s185_s0, 128 }
   0x2   :  { %s13_s7 = sshll.u32 %s145_s6, 4  ;;  %p98_p0 = scmp.ne.s32.totalorder %s185_s0, %s97_s10  ;;  %s14_s7 = int_to_ptr.vmem [resolvable:$true] %s13_s7 }
   0x3   :  { %p101_p1 = scmp.lt.u32.totalorder %s97_s10, %s185_s0 }
   0x5   :  { %p103_p2 = pnand %p101_p1, %p98_p0 }
   0x7   :  { %106 = shalt.err (!%p103_p2)
}
   0x8   :  { %s107_s15 = scalar_lea.vmem %s14_s7, 128  ;;  %p112_p4 = scmp.lt.s32.totalorder %s14_s7, %s14_s7 }
   0x9   :  { %p108_p3 = scmp.ne.s32.totalorder %s14_s7, %s107_s15  ;;  %p113_p5 = scmp.lt.s32.totalorder %s107_s15, %s107_s15 }
   0xb   :  { %p114_p6 = por %p113_p5, %p112_p4 }
   0xd   :  { %p115_p7 = pnand %p114_p6, %p108_p3 }
   0xf   :  { %118 = shalt.err (!%p115_p7)
}
  0x10   :  { %s146_s16 = smov 64   ;;  %s147_s17 = smov 4  }
  0x11   :  { %19 = dma.hbm_to_vmem [thread:$0]  %s185_s0, 128, %s14_s7, [#allocation3], %s146_s16, %s146_s16, %s147_s17  }
  0x12   :  { %141 = dma.done.wait [#allocation3], 128  }
  0x13   :  { %142 = vsyncadd [#allocation3], 4294967168  ;;  %vm25_vm0 = vcmask 1043456   ;;  %v24_v0 = vld [vmem:[#allocation2 + $0x4] sm:$0xf]  ;;  %s148_s0 = smov 96  }
  0x14   :  { %v23_v1 = vld [vmem:[#allocation2] sm:$0xf]  ;;  %v33_v2 = vsel %vm25_vm0, %v24_v0, 0.0  ;;  %s149_s20 = smov 32   ;;  %s150_s21 = smov [#allocation5]   ;;  %vm71_vm1 = vcmask 1041409  }
  0x15   :  { %v26_v3 = vsel %vm25_vm0, %v23_v1, 0.0  ;;  %v34_v4 = vrot.slane %v33_v2, 4  ;;  %s82_s22 = sshll.u32 %s150_s21, 4  ;;  %vm74_vm2 = vcmask 254976   ;;  %s83_s22 = int_to_ptr.vmem [resolvable:$true] %s82_s22 }
  0x16   :  { %v27_v5 = vrot.slane %v26_v3, 4  ;;  %s119_s23 = scalar_lea.vmem %s83_s22, 32  ;;  %p124_p9 = scmp.lt.s32.totalorder %s83_s22, %s83_s22 }
  0x17   :  { %v35_v6 = vadd.f32 %v34_v4, %v33_v2  ;;  %p120_p8 = scmp.ne.s32.totalorder %s83_s22, %s119_s23  ;;  %p125_p10 = scmp.lt.s32.totalorder %s119_s23, %s119_s23 }
  0x18   :  { %v28_v7 = vadd.f32 %v27_v5, %v26_v3 }
  0x19   :  { %v36_v8 = vrot.slane %v35_v6, 2  ;;  %p126_p11 = por %p125_p10, %p124_p9 }
  0x1a   :  { %v29_v9 = vrot.slane %v28_v7, 2 }
  0x1b   :  { %v37_v10 = vadd.f32 %v36_v8, %v35_v6  ;;  %p127_p12 = pnand %p126_p11, %p120_p8 }
  0x1c   :  { %v30_v11 = vadd.f32 %v29_v9, %v28_v7 }
  0x1d   :  { %v38_v12 = vrot.slane %v37_v10, 1 }
  0x1e   :  { %v31_v13 = vrot.slane %v30_v11, 1 }
  0x1f   :  { %v39_v14 = vadd.f32 %v38_v12, %v37_v10 }
  0x20   :  { %v32_v15 = vadd.f32 %v31_v13, %v30_v11 }
  0x21   :  { %52 = vrot.lane.b32.xlu1 %v39_v14, %s146_s16  ;;  %44 = vrot.lane.b32.xlu0 %v39_v14, %s148_s0 }
  0x25   :  { %50 = vrot.lane.b32.xlu1 %v32_v15, %s146_s16  ;;  %42 = vrot.lane.b32.xlu0 %v32_v15, %s148_s0 }
  0x29   :  { %58 = vrot.lane.b32.xlu1 %v32_v15, %s149_s20  ;;  %60 = vrot.lane.b32.xlu0 %v39_v14, %s149_s20 }
  0x93   :  { %v53_v16 = vpop.permute.xlu1 %52  ;;  %v45_v17 = vpop.permute.xlu0 %44 }
  0x94   :  { %v49_v18 = vadd.f32 %v45_v17, %v39_v14 }
  0x96   :  { %v57_v23 = vadd.f32 %v53_v16, %v49_v18 }
  0x97   :  { %v51_v19 = vpop.permute.xlu1 %50  ;;  %v43_v20 = vpop.permute.xlu0 %42 }
  0x98   :  { %v48_v21 = vadd.f32 %v43_v20, %v32_v15 }
  0x9a   :  { %v56_v22 = vadd.f32 %v51_v19, %v48_v21 }
  0x9b   :  { %v59_v24 = vpop.permute.xlu1 %58  ;;  %v61_v25 = vpop.permute.xlu0 %60 }
  0x9c   :  { %v64_v26 = vadd.f32 %v59_v24, %v56_v22  ;;  %v65_v27 = vadd.f32 %v61_v25, %v57_v23 }
  0x9e   :  { %v67_v28 = vmul.f32 0.0625, %v65_v27  ;;  %v66_v29 = vmul.f32 0.0625, %v64_v26 }
  0xa0   :  { %v70_v30 = vrot.slane %v67_v28, 7 }
  0xa2   :  { %v72_v31 = vsel %vm71_vm1, %v70_v30, %v66_v29 }
  0xa3   :  { %75 = vst.msk [vmem:[#allocation5] sm:$0x3] %vm74_vm2, %v72_v31 }
  0xa4   :  { %130 = shalt.err (!%p127_p12)
}
  0xa5   :  { %s131_s26 = scalar_lea.hbm %s186_s1, 32 }
  0xa6   :  { %p132_p13 = scmp.ne.s32.totalorder %s186_s1, %s131_s26  ;;  %p135_p0 = scmp.lt.u32.totalorder %s131_s26, %s186_s1 }
  0xa8   :  { %p137_p1 = pnand %p135_p0, %p132_p13 }
  0xaa   :  { %140 = shalt.err (!%p137_p1)
}
  0xab   :  { %85 = dma.vmem_to_hbm [thread:$0]  %s83_s22, 32, %s186_s1, [#allocation4]  }
  0xac   :  { %143 = dma.done.wait [#allocation4], 32  }
  0xad   :  { %144 = vsyncadd [#allocation4], 4294967264 }
  0xae   :  { %89 = vsyncpa [#allocation3], 1 }
  0xaf   :  { %90 = vsyncpa [#allocation4], 1 }

</bundles_post_ra>
